<compile_context>
chip_gen: v5e
topology: v5e:2x2
jax: 0.10.0
libtpu: 0.0.40
codegen_flags: <defaults>
</compile_context>

<pallas_src>
import numpy as np
import jax
import jax.numpy as jnp
from jax.experimental import pallas as pl
from jax.experimental.pallas import tpu as pltpu


def _round_up(x, m):
    return ((x + m - 1) // m) * m


def _carank_kernel(pool_roi_ref, pool_glob_ref, feat_ref, w1a_ref, w1b_ref,
                   b1_ref, w2_ref, b2_ref, out_ref, acc_ref):
    """Grid = (R_tiles, C_tiles); C axis is the (arbitrary) reduction axis."""
    c = pl.program_id(1)

    @pl.when(c == 0)
    def _init():
        acc_ref[...] = jnp.zeros_like(acc_ref)

    feat = feat_ref[...]                                   # (B*HW, c_tile), compute dtype
    # ROI mean and global mean for this C-tile (fp32 accumulation on the MXU).
    roi_mean = jnp.dot(pool_roi_ref[...], feat,
                       preferred_element_type=jnp.float32)  # (r_tile, c_tile)
    glob = jnp.dot(pool_glob_ref[...], feat,
                   preferred_element_type=jnp.float32)      # (r_tile, c_tile)

    # conv_att_1 is linear in pooled = [roi_mean, glob]; accumulate its pre-activation.
    cdt = w1a_ref.dtype
    acc_ref[...] += (
        jnp.dot(roi_mean.astype(cdt), w1a_ref[...], preferred_element_type=jnp.float32)
        + jnp.dot(glob.astype(cdt), w1b_ref[...], preferred_element_type=jnp.float32)
    )                                                       # (r_tile, hidden) fp32

    @pl.when(c == pl.num_programs(1) - 1)
    def _finalize():
        h1 = jnp.tanh(acc_ref[...] + b1_ref[...])           # (r_tile, hidden)
        # conv_att_2 (hidden -> 1): lane reduction instead of an N=1 matmul.
        z = jnp.sum(h1 * w2_ref[...], axis=1, keepdims=True) + b2_ref[...]
        # numerically-stable softplus
        out_ref[...] = jnp.maximum(z, 0.0) + jnp.log1p(jnp.exp(-jnp.abs(z)))


def context_aware_regional_attention(features, rois, spatial_scale, w1, b1, w2, b2,
                                     pooled_height=1, pooled_width=1,
                                     compute_dtype=jnp.bfloat16, c_tile=None):
    """Returns k of shape (1, num_rois), matching the PyTorch module (pooled 1x1)."""
    # TODO(synk): pooled_height/width > 1 (multi-bin ROI pooling) not implemented.
    assert pooled_height == 1 and pooled_width == 1
    B, C, H, W = features.shape
    R = rois.shape[0]
    HW = H * W
    BHW = B * HW
    hidden = w1.shape[0]

    # ---- host-side glue: ROI -> integer bin bounds (same arithmetic as torch loop) ---
    coords = jnp.round(rois[:, 1:] * spatial_scale).astype(jnp.int32)
    x1, y1, x2, y2 = coords[:, 0], coords[:, 1], coords[:, 2], coords[:, 3]
    roi_w = jnp.maximum(x2 - x1 + 1, 1)
    roi_h = jnp.maximum(y2 - y1 + 1, 1)
    hstart = jnp.clip(y1, 0, H)
    hend = jnp.clip(y1 + roi_h, 0, H)
    wstart = jnp.clip(x1, 0, W)
    wend = jnp.clip(x1 + roi_w, 0, W)

    # ---- pooling matrices (one-hot batch selection + 1/count folded in) --------------
    h_idx = jnp.arange(H)
    w_idx = jnp.arange(W)
    in_h = (h_idx[None, :] >= hstart[:, None]) & (h_idx[None, :] < hend[:, None])  # (R,H)
    in_w = (w_idx[None, :] >= wstart[:, None]) & (w_idx[None, :] < wend[:, None])  # (R,W)
    spatial = (in_h[:, :, None] & in_w[:, None, :]).reshape(R, HW).astype(jnp.float32)
    count = spatial.sum(axis=1)                                     # (R,)
    nonempty = (count > 0).astype(jnp.float32)
    inv_count = nonempty / jnp.maximum(count, 1.0)

    batch_idx = rois[:, 0].astype(jnp.int32)
    onehot = (batch_idx[:, None] == jnp.arange(B)[None, :]).astype(jnp.float32)  # (R,B)

    pool_roi = (onehot[:, :, None]
                * (spatial * inv_count[:, None])[:, None, :]).reshape(R, BHW)
    # global mean row (zeroed for empty ROIs, exactly like the torch code)
    pool_glob = jnp.broadcast_to(
        ((onehot * nonempty[:, None]) / float(HW))[:, :, None], (R, B, HW)
    ).reshape(R, BHW)

    # ---- padding / tiling -------------------------------------------------------------
    r_tile = min(_round_up(max(R, 1), 8), 128)
    Rp = _round_up(R, r_tile)
    pool_roi = jnp.pad(pool_roi, ((0, Rp - R), (0, 0))).astype(compute_dtype)
    pool_glob = jnp.pad(pool_glob, ((0, Rp - R), (0, 0))).astype(compute_dtype)

    if c_tile is None:
        c_tile = (512 if C % 512 == 0 else
                  256 if C % 256 == 0 else
                  128 if C % 128 == 0 else C)
    assert C % c_tile == 0
    num_c = C // c_tile
    num_r = Rp // r_tile

    # features -> (B*HW, C): spatial on K (sublane), channels on lanes
    feat = jnp.transpose(features, (0, 2, 3, 1)).reshape(BHW, C).astype(compute_dtype)

    w1 = jnp.asarray(w1, jnp.float32)
    w1a_t = w1[:, :C].T.astype(compute_dtype)          # (C, hidden)  ROI-mean half
    w1b_t = w1[:, C:].T.astype(compute_dtype)          # (C, hidden)  global-mean half
    b1_ = jnp.asarray(b1, jnp.float32).reshape(1, hidden)
    w2_ = jnp.asarray(w2, jnp.float32).reshape(1, hidden)
    b2_ = jnp.asarray(b2, jnp.float32).reshape(1, 1)

    dsz = jnp.dtype(compute_dtype).itemsize
    cost = pl.CostEstimate(
        flops=int(2 * (2 * Rp * BHW * C) + 2 * (2 * Rp * C * hidden) + 2 * Rp * hidden),
        transcendentals=int(Rp * hidden + Rp),
        bytes_accessed=int(dsz * (num_r * BHW * C + 2 * Rp * BHW + 2 * C * hidden)
                           + 4 * (Rp + hidden + 1)),
    )

    out = pl.pallas_call(
        _carank_kernel,
        out_shape=jax.ShapeDtypeStruct((Rp, 1), jnp.float32),
        grid_spec=pltpu.PrefetchScalarGridSpec(
            num_scalar_prefetch=0,
            grid=(num_r, num_c),
            in_specs=[
                pl.BlockSpec((r_tile, BHW), lambda i, c: (i, 0)),      # pool_roi
                pl.BlockSpec((r_tile, BHW), lambda i, c: (i, 0)),      # pool_glob
                pl.BlockSpec((BHW, c_tile), lambda i, c: (0, c)),      # features (streamed)
                pl.BlockSpec((c_tile, hidden), lambda i, c: (c, 0)),   # w1a^T tile
                pl.BlockSpec((c_tile, hidden), lambda i, c: (c, 0)),   # w1b^T tile
                pl.BlockSpec((1, hidden), lambda i, c: (0, 0)),        # b1
                pl.BlockSpec((1, hidden), lambda i, c: (0, 0)),        # w2
                pl.BlockSpec((1, 1), lambda i, c: (0, 0)),             # b2
            ],
            out_specs=pl.BlockSpec((r_tile, 1), lambda i, c: (i, 0)),
            scratch_shapes=[pltpu.VMEM((r_tile, hidden), jnp.float32)],
        ),
        compiler_params=pltpu.CompilerParams(
            dimension_semantics=("parallel", "arbitrary"),
            vmem_limit_bytes=64 * 1024 * 1024,
        ),
        cost_estimate=cost,
    )(pool_roi, pool_glob, feat, w1a_t, w1b_t, b1_, w2_, b2_)

    return out[:R, 0].reshape(1, R)


def reference_forward(features, rois, spatial_scale, w1, b1, w2, b2):
    """Pure numpy mirror of the PyTorch forward (pooled 1x1)."""
    features = np.asarray(features)
    rois = np.asarray(rois)
    B, C, H, W = features.shape
    R = rois.shape[0]
    pooled = np.zeros((R, 2 * C), np.float32)
    for r in range(R):
        bi = int(rois[r, 0])
        x1, y1, x2, y2 = np.round(rois[r, 1:] * spatial_scale).astype(int)
        rw = max(x2 - x1 + 1, 1)
        rh = max(y2 - y1 + 1, 1)
        hs = min(H, max(0, 0 + y1))
        he = min(H, max(0, int(np.ceil(float(rh))) + y1))
        ws = min(W, max(0, 0 + x1))
        we = min(W, max(0, int(np.ceil(float(rw))) + x1))
        if he <= hs or we <= ws:
            continue
        data = features[bi]
        roi_mean = data[:, hs:he, ws:we].mean(axis=(1, 2))
        gmean = data.mean(axis=(1, 2))
        pooled[r] = np.concatenate([roi_mean, gmean]).astype(np.float32)
    h = np.tanh(pooled @ np.asarray(w1).T + np.asarray(b1)[None, :])
    z = h @ np.asarray(w2).T + np.asarray(b2)[None, :]
    k = np.maximum(z, 0.0) + np.log1p(np.exp(-np.abs(z)))
    return k.reshape(1, R)


if __name__ == "__main__":
    key = jax.random.PRNGKey(0)
    B, C, H, W = 2, 256, 16, 16     # small stand-in for the real (B, 2048, H, W)
    R = 8
    hidden = 64
    spatial_scale = 0.5

    k1, k2, k3, k4, k5, k6 = jax.random.split(key, 6)
    features = jax.random.normal(k1, (B, C, H, W), jnp.float32)

    # rois: [batch_idx, x1, y1, x2, y2] in original-image coordinates
    batch_ids = jax.random.randint(k2, (R, 1), 0, B).astype(jnp.float32)
    p1 = jax.random.uniform(k3, (R, 2), minval=0.0, maxval=20.0)
    sz = jax.random.uniform(k4, (R, 2), minval=2.0, maxval=14.0)
    p2 = p1 + sz
    rois = jnp.concatenate(
        [batch_ids, p1[:, :1], p1[:, 1:], p2[:, :1], p2[:, 1:]], axis=1
    ).astype(jnp.float32)
    # force last ROI off-image to exercise the empty-bin (zero row) path
    rois = rois.at[R - 1, 1:].set(jnp.array([40.0, 40.0, 50.0, 50.0], jnp.float32))

    # deterministic synthetic parameters (Conv1d with kernel-size 1 == dense matmul)
    w1 = jax.random.normal(k5, (hidden, 2 * C), jnp.float32) * 0.1
    b1 = jnp.full((hidden,), 0.01, jnp.float32)
    w2 = jax.random.normal(k6, (1, hidden), jnp.float32) * 0.1
    b2 = jnp.full((1,), 0.02, jnp.float32)

    # c_tile=128 -> 2 streamed C-tiles in the grid (exercises the accumulator path).
    out = context_aware_regional_attention(
        features, rois, spatial_scale, w1, b1, w2, b2,
        compute_dtype=jnp.bfloat16, c_tile=128)
    out = jax.block_until_ready(out)

    ref = reference_forward(features, rois, spatial_scale, w1, b1, w2, b2)
    # tolerance loosened vs the fp32 reference because features/pooling run in bf16
    # (fp32 MXU accumulation via preferred_element_type).
    np.testing.assert_allclose(np.asarray(out, np.float32), ref, rtol=3e-2, atol=3e-2)
    print("KERNEL_OK")
</pallas_src>

<mosaic_0001>
module attributes {stable_mosaic.version = 11 : i64} {
  func.func @_carank_kernel(%arg0: i32, %arg1: i32, %arg2: memref<8x512xbf16, #tpu.memory_space<vmem>>, %arg3: memref<8x512xbf16, #tpu.memory_space<vmem>>, %arg4: memref<512x128xbf16, #tpu.memory_space<vmem>>, %arg5: memref<128x64xbf16, #tpu.memory_space<vmem>>, %arg6: memref<128x64xbf16, #tpu.memory_space<vmem>>, %arg7: memref<1x64xf32, #tpu.memory_space<vmem>>, %arg8: memref<1x64xf32, #tpu.memory_space<vmem>>, %arg9: memref<1x1xf32, #tpu.memory_space<vmem>>, %arg10: memref<8x1xf32, #tpu.memory_space<vmem>>, %arg11: memref<8x64xf32, #tpu.memory_space<vmem>>) attributes {dimension_semantics = [#tpu.dimension_semantics<parallel>, #tpu.dimension_semantics<arbitrary>], iteration_bounds = array<i64: 1, 2>, scalar_prefetch = 0 : i64, scratch_operands = 1 : i64, tpu.core_type = #tpu.core_type<tc>, window_params = [{transform_indices = @transform_0, window_bounds = array<i64: 8, 512>}, {transform_indices = @transform_1, window_bounds = array<i64: 8, 512>}, {transform_indices = @transform_2, window_bounds = array<i64: 512, 128>}, {transform_indices = @transform_3, window_bounds = array<i64: 128, 64>}, {transform_indices = @transform_4, window_bounds = array<i64: 128, 64>}, {pipeline_mode = #tpu.pipeline_mode<synchronous>, transform_indices = @transform_5, window_bounds = array<i64: 1, 64>}, {pipeline_mode = #tpu.pipeline_mode<synchronous>, transform_indices = @transform_6, window_bounds = array<i64: 1, 64>}, {pipeline_mode = #tpu.pipeline_mode<synchronous>, transform_indices = @transform_7, window_bounds = array<i64: 1, 1>}, {transform_indices = @transform_8, window_bounds = array<i64: 8, 1>}]} {
    %c0_i32 = arith.constant 0 : i32
    %0 = arith.cmpi eq, %arg1, %c0_i32 : i32
    %1 = arith.extui %0 : i1 to i32
    %c0_i32_0 = arith.constant 0 : i32
    %2 = arith.cmpi ne, %1, %c0_i32_0 : i32
    scf.if %2 {
      %cst_18 = arith.constant 0.000000e+00 : f32
      %21 = vector.broadcast %cst_18 : f32 to vector<8x64xf32>
      %c0_19 = arith.constant 0 : index
      %c0_20 = arith.constant 0 : index
      %22 = vector.load %arg11[%c0_19, %c0_20] : memref<8x64xf32, #tpu.memory_space<vmem>>, vector<8x64xf32>
      tpu.vector_store %arg11[%c0_19, %c0_20], %21 {strides = array<i32>} : memref<8x64xf32, #tpu.memory_space<vmem>>, vector<8x64xf32>,
    } else {
    }
    %c0 = arith.constant 0 : index
    %c0_1 = arith.constant 0 : index
    %3 = vector.load %arg4[%c0, %c0_1] : memref<512x128xbf16, #tpu.memory_space<vmem>>, vector<512x128xbf16>
    %c0_2 = arith.constant 0 : index
    %c0_3 = arith.constant 0 : index
    %4 = vector.load %arg2[%c0_2, %c0_3] : memref<8x512xbf16, #tpu.memory_space<vmem>>, vector<8x512xbf16>
    %cst = arith.constant dense<0.000000e+00> : vector<8x128xf32>
    %5 = tpu.matmul %4, %3, %cst {dimension_numbers = #tpu.dot_dimension_numbers<[1], [0], [0], [1], [0, 0, 1, 1], [], []>} : vector<8x512xbf16>, vector<512x128xbf16>, vector<8x128xf32> -> vector<8x128xf32>
    %c0_4 = arith.constant 0 : index
    %c0_5 = arith.constant 0 : index
    %6 = vector.load %arg3[%c0_4, %c0_5] : memref<8x512xbf16, #tpu.memory_space<vmem>>, vector<8x512xbf16>
    %cst_6 = arith.constant dense<0.000000e+00> : vector<8x128xf32>
    %7 = tpu.matmul %6, %3, %cst_6 {dimension_numbers = #tpu.dot_dimension_numbers<[1], [0], [0], [1], [0, 0, 1, 1], [], []>} : vector<8x512xbf16>, vector<512x128xbf16>, vector<8x128xf32> -> vector<8x128xf32>
    %c0_7 = arith.constant 0 : index
    %c0_8 = arith.constant 0 : index
    %8 = vector.load %arg11[%c0_7, %c0_8] : memref<8x64xf32, #tpu.memory_space<vmem>>, vector<8x64xf32>
    %9 = arith.truncf %5 : vector<8x128xf32> to vector<8x128xbf16>
    %c0_9 = arith.constant 0 : index
    %c0_10 = arith.constant 0 : index
    %10 = vector.load %arg5[%c0_9, %c0_10] : memref<128x64xbf16, #tpu.memory_space<vmem>>, vector<128x64xbf16>
    %cst_11 = arith.constant dense<0.000000e+00> : vector<8x64xf32>
    %11 = tpu.matmul %9, %10, %cst_11 {dimension_numbers = #tpu.dot_dimension_numbers<[1], [0], [0], [1], [0, 0, 1, 1], [], []>} : vector<8x128xbf16>, vector<128x64xbf16>, vector<8x64xf32> -> vector<8x64xf32>
    %12 = arith.truncf %7 : vector<8x128xf32> to vector<8x128xbf16>
    %c0_12 = arith.constant 0 : index
    %c0_13 = arith.constant 0 : index
    %13 = vector.load %arg6[%c0_12, %c0_13] : memref<128x64xbf16, #tpu.memory_space<vmem>>, vector<128x64xbf16>
    %cst_14 = arith.constant dense<0.000000e+00> : vector<8x64xf32>
    %14 = tpu.matmul %12, %13, %cst_14 {dimension_numbers = #tpu.dot_dimension_numbers<[1], [0], [0], [1], [0, 0, 1, 1], [], []>} : vector<8x128xbf16>, vector<128x64xbf16>, vector<8x64xf32> -> vector<8x64xf32>
    %15 = arith.addf %11, %14 : vector<8x64xf32>
    %16 = arith.addf %8, %15 : vector<8x64xf32>
    %c0_15 = arith.constant 0 : index
    %c0_16 = arith.constant 0 : index
    %17 = vector.load %arg11[%c0_15, %c0_16] : memref<8x64xf32, #tpu.memory_space<vmem>>, vector<8x64xf32>
    tpu.vector_store %arg11[%c0_15, %c0_16], %16 {strides = array<i32>} : memref<8x64xf32, #tpu.memory_space<vmem>>, vector<8x64xf32>,
    %c1_i32 = arith.constant 1 : i32
    %18 = arith.cmpi eq, %arg1, %c1_i32 : i32
    %19 = arith.extui %18 : i1 to i32
    %c0_i32_17 = arith.constant 0 : i32
    %20 = arith.cmpi ne, %19, %c0_i32_17 : i32
    scf.if %20 {
      %c0_18 = arith.constant 0 : index
      %c0_19 = arith.constant 0 : index
      %21 = vector.load %arg11[%c0_18, %c0_19] : memref<8x64xf32, #tpu.memory_space<vmem>>, vector<8x64xf32>
      %c0_20 = arith.constant 0 : index
      %c0_21 = arith.constant 0 : index
      %22 = vector.load %arg7[%c0_20, %c0_21] : memref<1x64xf32, #tpu.memory_space<vmem>>, vector<1x64xf32>
      %23 = vector.broadcast %22 : vector<1x64xf32> to vector<8x64xf32>
      %24 = arith.addf %21, %23 : vector<8x64xf32>
      %25 = math.tanh %24 : vector<8x64xf32>
      %c0_22 = arith.constant 0 : index
      %c0_23 = arith.constant 0 : index
      %26 = vector.load %arg8[%c0_22, %c0_23] : memref<1x64xf32, #tpu.memory_space<vmem>>, vector<1x64xf32>
      %27 = vector.broadcast %26 : vector<1x64xf32> to vector<8x64xf32>
      %28 = arith.mulf %25, %27 : vector<8x64xf32>
      %cst_24 = arith.constant dense<0.000000e+00> : vector<8xf32>
      %29 = vector.multi_reduction <add>, %28, %cst_24 [1] : vector<8x64xf32> to vector<8xf32>
      %30 = vector.shape_cast %29 : vector<8xf32> to vector<8x1xf32>
      %c0_25 = arith.constant 0 : index
      %c0_26 = arith.constant 0 : index
      %31 = vector.load %arg9[%c0_25, %c0_26] : memref<1x1xf32, #tpu.memory_space<vmem>>, vector<1x1xf32>
      %32 = vector.broadcast %31 : vector<1x1xf32> to vector<8x1xf32>
      %33 = arith.addf %30, %32 : vector<8x1xf32>
      %cst_27 = arith.constant 0.000000e+00 : f32
      %34 = vector.broadcast %cst_27 : f32 to vector<8x1xf32>
      %35 = arith.maximumf %33, %34 : vector<8x1xf32>
      %36 = math.absf %33 : vector<8x1xf32>
      %cst_28 = arith.constant 0.000000e+00 : f32
      %37 = vector.broadcast %cst_28 : f32 to vector<8x1xf32>
      %38 = arith.subf %37, %36 : vector<8x1xf32>
      %39 = math.exp %38 : vector<8x1xf32>
      %40 = math.log1p %39 : vector<8x1xf32>
      %41 = arith.addf %35, %40 : vector<8x1xf32>
      %c0_29 = arith.constant 0 : index
      %c0_30 = arith.constant 0 : index
      %42 = vector.load %arg10[%c0_29, %c0_30] : memref<8x1xf32, #tpu.memory_space<vmem>>, vector<8x1xf32>
      tpu.vector_store %arg10[%c0_29, %c0_30], %41 {strides = array<i32>} : memref<8x1xf32, #tpu.memory_space<vmem>>, vector<8x1xf32>,
    } else {
    }
    return
  }
  func.func @transform_0(%arg0: i32, %arg1: i32) -> (i32, i32) {
    %c0_i32 = arith.constant 0 : i32
    %c0_i32_0 = arith.constant 0 : i32
    return %arg0, %c0_i32 : i32, i32
  }
  func.func @transform_1(%arg0: i32, %arg1: i32) -> (i32, i32) {
    %c0_i32 = arith.constant 0 : i32
    %c0_i32_0 = arith.constant 0 : i32
    return %arg0, %c0_i32 : i32, i32
  }
  func.func @transform_2(%arg0: i32, %arg1: i32) -> (i32, i32) {
    %c0_i32 = arith.constant 0 : i32
    %c0_i32_0 = arith.constant 0 : i32
    return %c0_i32, %arg1 : i32, i32
  }
  func.func @transform_3(%arg0: i32, %arg1: i32) -> (i32, i32) {
    %c0_i32 = arith.constant 0 : i32
    %c0_i32_0 = arith.constant 0 : i32
    return %arg1, %c0_i32 : i32, i32
  }
  func.func @transform_4(%arg0: i32, %arg1: i32) -> (i32, i32) {
    %c0_i32 = arith.constant 0 : i32
    %c0_i32_0 = arith.constant 0 : i32
    return %arg1, %c0_i32 : i32, i32
  }
  func.func @transform_5(%arg0: i32, %arg1: i32) -> (i32, i32) {
    %c0_i32 = arith.constant 0 : i32
    %c0_i32_0 = arith.constant 0 : i32
    %c0_i32_1 = arith.constant 0 : i32
    return %c0_i32, %c0_i32_0 : i32, i32
  }
  func.func @transform_6(%arg0: i32, %arg1: i32) -> (i32, i32) {
    %c0_i32 = arith.constant 0 : i32
    %c0_i32_0 = arith.constant 0 : i32
    %c0_i32_1 = arith.constant 0 : i32
    return %c0_i32, %c0_i32_0 : i32, i32
  }
  func.func @transform_7(%arg0: i32, %arg1: i32) -> (i32, i32) {
    %c0_i32 = arith.constant 0 : i32
    %c0_i32_0 = arith.constant 0 : i32
    %c0_i32_1 = arith.constant 0 : i32
    return %c0_i32, %c0_i32_0 : i32, i32
  }
  func.func @transform_8(%arg0: i32, %arg1: i32) -> (i32, i32) {
    %c0_i32 = arith.constant 0 : i32
    %c0_i32_0 = arith.constant 0 : i32
    return %arg0, %c0_i32 : i32, i32
  }
}

</mosaic_0001>

<bundles_post_ra>
// kernel: tpu_custom_call.1
= control target key start
LH: loop header
LB: loop body
LE: loop exit
PB: predicated region body
PF: predicated region fallthrough
CT: control target
= control target key end

     0   :  { %s1845_s0 = inlined_call_operand.vmem [shape: bf16[8,512], index: 0, kind: input, shape index: {}]   ;;  %s1846_s1 = inlined_call_operand.vmem [shape: bf16[8,512], index: 1, kind: input, shape index: {}]   ;;  %s1847_s2 = inlined_call_operand.hbm [shape: bf16[512,256], index: 2, kind: input, shape index: {}]   ;;  %s1848_s3 = inlined_call_operand.vmem [shape: bf16[256,64], index: 3, kind: input, shape index: {}]   ;;  %s1849_s4 = inlined_call_operand.vmem [shape: bf16[256,64], index: 4, kind: input, shape index: {}]   ;;  %s1850_s5 = inlined_call_operand.vmem [shape: f32[1,64], index: 5, kind: input, shape index: {}]   ;;  %s1851_s6 = inlined_call_operand.vmem [shape: f32[1,64], index: 6, kind: input, shape index: {}]   ;;  %s1852_s7 = inlined_call_operand.<no memory space> [shape: f32[1,1], index: 7, kind: input, shape index: {}]   ;;  %s1853_s8 = inlined_call_operand.vmem [shape: f32[8,1], index: 8, kind: output, shape index: {}]  }
   0x1   :  { %v13_v0 = vstv %s1852_s7 }
   0x2   :  { %14 = vst [vmem:[#allocation3] sm:$0x1] %v13_v0 }
   0x3   :  { %15 = vsyncpa [#allocation5], 0 }
   0x4   :  { %17 = vsyncpa [#allocation5 + $0x1], 0  ;;  %s1606_s29 = smov 0   ;;  %s1608_s30 = smov 0  }
   0x5   :  { %s1610_s9 = smov 0   ;;  %s1612_s10 = smov 0  }
   0x6   :  { %s1614_s11 = smov 0   ;;  %s1616_s12 = smov 0  }
   0x7 LB: > { %s1146_s7 = sadd.s32 4294967295, %s1552_s12   ;;  %s32_s13 = sadd.s32 1, %s1548_s11  ;;  %s1552_s12 = sphi %s1616_s12, %s23_s12   ;;  %s1548_s11 = sphi %s1614_s11, %s1860_s11   ;;  %s1544_s10 = sphi %s1612_s10, %s1859_s10   ;;  %s1540_s9 = sphi %s1610_s9, %s1858_s9   ;;  %s1536_s30 = sphi %s1608_s30, %s1857_s30   ;;  %s1532_s29 = sphi %s1606_s29, %s1856_s29  }
   0x8   : > { %p33_p0 = scmp.ge.s32.totalorder %s32_s13, 2  ;;  %s94_s14 = sadd.s32 1, %s1540_s9 }
   0x9   : > { %p101_p1 = scmp.ne.s32.totalorder %s1540_s9, %s1536_s30  ;;  %p102_p2 = scmp.eq.s32.totalorder %s1552_s12, 0 }
   0xa   : > { %s1862_s13 = smov (%p33_p0, %s32_s13), 0  ;;  %p107_p4 = scmp.ne.s32.totalorder %s1536_s30, %s1532_s29 }
   0xb   : > { %p1642_p3 = por %p102_p2, %p101_p1  ;;  %s91_s16 = ssub.s32 %s1548_s11, %s1862_s13 }
   0xc   : > { %p108_p5 = scmp.eq.s32.totalorder %s1146_s7, 0  ;;  %p92_p6 = scmp.eq.s32.totalorder %s91_s16, 0 }
   0xd   : > { %p1410_p8 = scmp.lt.s32.totalorder %s1552_s12, 2  ;;  %s297_s19 = sand.u32 1, %s1540_s9  }
   0xe   : > { %p1649_p7 = por %p108_p5, %p107_p4  ;;  %s1152_s20 = sshll.u32 %s1548_s11, 2 }
   0xf   : > { %s1655_s18 = scalar_select %p92_p6, %s1540_s9, %s94_s14  }
  0x10   : > { %s1151_s21 = sshll.u32 %s297_s19, 8  ;;  %s305_s24 = scalar_lea.hbm %s1847_s2, %s1152_s20 }
  0x11   : > { %s306_s25 = sshll.u32 %s305_s24, 4  ;;  %s301_s26 = scalar_lea.vmem [#allocation4], %s1151_s21  ;;  %s307_s25 = int_to_ptr.hbm [resolvable:$true] %s306_s25 }
  0x12   : > { %s308_s27 = sshll.u32 %s301_s26, 4  ;;  %p1407_p9 = pnand %p1410_p8, %p1642_p3  ;;  %s309_s27 = int_to_ptr.vmem [resolvable:$true] %s308_s27 }
  0x13   : > { %p1153_p10 = scmp.ge.s32.totalorder %s1552_s12, 1  ;;  %s298_s28 = scalar_lea.sflag [#allocation5], %s297_s19 }
  0x14   : > { %s1554_s29 = smov 128   ;;  %s1555_s7 = smov 64  }
  0x15   : > { %s1556_s14 = smov 4   ;;  %p334_p11 = scmp.lt.s32.totalorder %s1552_s12, 3 }
  0x16   : > { %1409 = dma.hbm_to_vmem [thread:$0]  (!%p1407_p9), %s307_s25, 4096, %s309_s27, %s298_s28, %s1554_s29, %s1555_s7, %s1556_s14  }
  0x17   : > { %p335_p12 = pnand %p1153_p10, %p334_p11 }
  0x18   : > { %s340_s16 = sand.u32 (!%p335_p12), 1, %s1536_s30  }
  0x19   : > { %338 = sbr.rel (%p335_p12) target bundleno = 540 (0x21c), region = 52  ;;  %s1154_s20 = sshll.u32 (!%p335_p12), %s340_s16, 8 }
  0x1a   : > { %s341_s22 = scalar_lea.sflag (!%p335_p12), [#allocation5], %s340_s16  ;;  %s1667_s21 = scalar_lea.vmem (!%p335_p12), [#allocation4], %s1154_s20 }
  0x1e   : > { %1527 = dma.done.wait (%p1649_p7), %s341_s22, 4096  }
  0x1f   : > { %1529 = vsyncadd (%p1649_p7), %s341_s22, 4294963200  ;;  %s1155_s15 = sshll.u32 %s1544_s10, 4  ;;  %p1159_p0 = scmp.ne.s32.totalorder %s1544_s10, 0 }
  0x20   : > { %p408_p13 = scmp.lt.s32.totalorder %s1155_s15, 31 }
  0x21   : > { %426 = sbr.rel (%p1159_p0) target bundleno = 40 (0x28), region = 60 }
  0x22   : > { %s1864_s15 = smov (!%p408_p13, %s1155_s15), 31 }
  0x23   : > { %s1156_s19 = sshll.u32 %s1864_s15, 2 }
  0x24   : > { %s1677_s25 = scalar_lea.vmem %s1848_s3, %s1156_s19  ;;  %s1682_s28 = scalar_lea.vmem %s1849_s4, %s1156_s19 }
  0x26   : > { %vm427_vm0 = vcmask 523264   ;;  %v1557_v1 = vmov 0.0  }
  0x27   : > { %428 = vst.msk [vmem:[#allocation2] sm:$0xff] %vm427_vm0, %v1557_v1 }
  0x28 PF: > { %v1686_v2 = vld [vmem:[%s1667_s21 + $0x38] sm:$0xff]  ;;  %v1700_v6 = vld [vmem:[%s1667_s21 + $0x30] sm:$0xff]  ;;  %v1716_v10 = vld [vmem:[%s1667_s21 + $0x28] sm:$0xff]  ;;  %vm979_vm1 = vcmask 523264   ;;  %p1352_p1 = scmp.ne.s32.totalorder %s1544_s10, 1 }
  0x29   : > { %v1689_v3 = vld [vmem:[%s1667_s21 + $0x78] sm:$0xff]  ;;  %701 = vmatpush.bf16.msra.mxu0 %v1686_v2  ;;  %v1703_v7 = vld [vmem:[%s1667_s21 + $0x70] sm:$0xff]  ;;  %v1719_v11 = vld [vmem:[%s1667_s21 + $0x68] sm:$0xff] }
  0x2a   : > { %v1692_v4 = vld [vmem:[%s1667_s21 + $0xb8] sm:$0xff]  ;;  %714 = vmatpush.bf16.msra.mxu1 %v1689_v3  ;;  %v1708_v8 = vld [vmem:[%s1667_s21 + $0xb0] sm:$0xff]  ;;  %v1724_v12 = vld [vmem:[%s1667_s21 + $0xa8] sm:$0xff] }
  0x2b   : > { %v1695_v5 = vld [vmem:[%s1667_s21 + $0xf8] sm:$0xff]  ;;  %727 = vmatpush.bf16.msra.mxu2 %v1692_v4  ;;  %v1711_v9 = vld [vmem:[%s1667_s21 + $0xf0] sm:$0xff]  ;;  %v1727_v13 = vld [vmem:[%s1667_s21 + $0xe8] sm:$0xff] }
  0x2c   : > { %740 = vmatpush.bf16.msra.mxu3 %v1695_v5  ;;  %v1732_v14 = vld [vmem:[%s1667_s21 + $0x20] sm:$0xff]  ;;  %v1748_v18 = vld [vmem:[%s1667_s21 + $0x18] sm:$0xff]  ;;  %v1358_v22 = vld [vmem:[%s1667_s21 + $0x10] sm:$0xff] }
  0x2d   : > { %702 = vmatpush.bf16.msra.mxu0 %v1700_v6  ;;  %v1735_v15 = vld [vmem:[%s1667_s21 + $0x60] sm:$0xff]  ;;  %v1751_v19 = vld [vmem:[%s1667_s21 + $0x58] sm:$0xff]  ;;  %v1366_v23 = vld [vmem:[%s1667_s21 + $0x50] sm:$0xff] }
  0x2e   : > { %715 = vmatpush.bf16.msra.mxu1 %v1703_v7  ;;  %v1740_v16 = vld [vmem:[%s1667_s21 + $0xa0] sm:$0xff]  ;;  %v1375_v20 = vld [vmem:[%s1667_s21 + $0x98] sm:$0xff]  ;;  %v1374_v24 = vld [vmem:[%s1667_s21 + $0x90] sm:$0xff] }
  0x2f   : > { %728 = vmatpush.bf16.msra.mxu2 %v1708_v8  ;;  %v1743_v17 = vld [vmem:[%s1667_s21 + $0xe0] sm:$0xff]  ;;  %v1383_v21 = vld [vmem:[%s1667_s21 + $0xd8] sm:$0xff]  ;;  %v1382_v25 = vld [vmem:[%s1667_s21 + $0xd0] sm:$0xff] }
  0x30   : > { %741 = vmatpush.bf16.msra.mxu3 %v1711_v9  ;;  %v1357_v26 = vld [vmem:[%s1667_s21 + $0x8] sm:$0xff]  ;;  %v494_v30 = vld [vmem:[%s1845_s0 + $0x8] sm:$0xff]  ;;  %v493_v31 = vld [vmem:[%s1845_s0] sm:$0xff] }
  0x31   : > { %703 = vmatpush.bf16.msra.mxu0 %v1716_v10  ;;  %v1365_v27 = vld [vmem:[%s1667_s21 + $0x48] sm:$0xff]  ;;  %v1356_v32 = vld [vmem:[%s1667_s21] sm:$0xff]  ;;  %v499_v34 = vunpack.c.l.b16 %v494_v30  ;;  %v500_v35 = vunpack.c.h.b16 %v494_v30  ;;  %v497_v38 = vunpack.c.l.b16 %v493_v31  ;;  %v498_v39 = vunpack.c.h.b16 %v493_v31  ;;  %v753_v44 = vld [vmem:[%s1846_s1] sm:$0xff] }
  0x32   : > { %716 = vmatpush.bf16.msra.mxu1 %v1719_v11  ;;  %v1373_v28 = vld [vmem:[%s1667_s21 + $0x88] sm:$0xff]  ;;  %v1364_v33 = vld [vmem:[%s1667_s21 + $0x40] sm:$0xff]  ;;  %v757_v46 = vunpack.c.l.b16 %v753_v44  ;;  %v758_v47 = vunpack.c.h.b16 %v753_v44  ;;  %v1392_v57 = vld [vmem:[%s1677_s25 + $0x20] sm:$0xff] }
  0x33   : > { %729 = vmatpush.bf16.msra.mxu2 %v1724_v12  ;;  %v1381_v29 = vld [vmem:[%s1667_s21 + $0xc8] sm:$0xff]  ;;  %v1372_v36 = vld [vmem:[%s1667_s21 + $0x80] sm:$0xff]  ;;  %v503_v40 = vpack.c.b16 %v499_v34, %v499_v34  ;;  %v504_v41 = vpack.c.b16 %v500_v35, %v500_v35  ;;  %v501_v42 = vpack.c.b16 %v497_v38, %v497_v38  ;;  %v502_v43 = vpack.c.b16 %v498_v39, %v498_v39  ;;  %v1388_v63 = vld [vmem:[%s1677_s25] sm:$0xff] }
  0x34   : > { %742 = vmatpush.bf16.msra.mxu3 %v1727_v13  ;;  %v1380_v37 = vld [vmem:[%s1667_s21 + $0xc0] sm:$0xff]  ;;  %v1395_v50 = vld [vmem:[%s1677_s25 + $0x38] sm:$0xff]  ;;  %v761_v51 = vpack.c.b16 %v757_v46, %v757_v46  ;;  %v762_v52 = vpack.c.b16 %v758_v47, %v758_v47  ;;  %v1400_v1 = vld [vmem:[%s1682_s28 + $0x20] sm:$0xff] }
  0x35   : > { %704 = vmatpush.bf16.msra.mxu0 %v1732_v14  ;;  %v754_v45 = vld [vmem:[%s1846_s1 + $0x8] sm:$0xff]  ;;  %v1394_v55 = vld [vmem:[%s1677_s25 + $0x30] sm:$0xff]  ;;  %v1391_v58 = vld [vmem:[%s1677_s25 + $0x18] sm:$0xff] }
  0x36   : > { %717 = vmatpush.bf16.msra.mxu1 %v1735_v15  ;;  %v759_v48 = vunpack.c.l.b16 %v754_v45  ;;  %v760_v49 = vunpack.c.h.b16 %v754_v45  ;;  %v1393_v56 = vld [vmem:[%s1677_s25 + $0x28] sm:$0xff]  ;;  %v1390_v59 = vld [vmem:[%s1677_s25 + $0x10] sm:$0xff]  ;;  %v1403_v60 = vld [vmem:[%s1682_s28 + $0x38] sm:$0xff] }
  0x37   : > { %730 = vmatpush.bf16.msra.mxu2 %v1740_v16  ;;  %v1389_v61 = vld [vmem:[%s1677_s25 + $0x8] sm:$0xff]  ;;  %v1402_v62 = vld [vmem:[%s1682_s28 + $0x30] sm:$0xff] }
  0x38   : > { %743 = vmatpush.bf16.msra.mxu3 %v1743_v17  ;;  %v763_v53 = vpack.c.b16 %v759_v48, %v759_v48  ;;  %v764_v54 = vpack.c.b16 %v760_v49, %v760_v49  ;;  %v1401_v0 = vld [vmem:[%s1682_s28 + $0x28] sm:$0xff] }
  0x39   : > { %705 = vmatpush.bf16.msra.mxu0 %v1748_v18 }
  0x3a   : > { %718 = vmatpush.bf16.msra.mxu1 %v1751_v19 }
  0x3b   : > { %731 = vmatpush.bf16.msra.mxu2 %v1375_v20 }
  0x3c   : > { %744 = vmatpush.bf16.msra.mxu3 %v1383_v21 }
  0x3d   : > { %706 = vmatpush.bf16.msra.mxu0 %v1358_v22 }
  0x3e   : > { %719 = vmatpush.bf16.msra.mxu1 %v1366_v23 }
  0x3f   : > { %732 = vmatpush.bf16.msra.mxu2 %v1374_v24 }
  0x40   : > { %745 = vmatpush.bf16.msra.mxu3 %v1382_v25 }
  0x41   : > { %707 = vmatpush.bf16.msra.mxu0 %v1357_v26 }
  0x42   : > { %720 = vmatpush.bf16.msra.mxu1 %v1365_v27 }
  0x43   : > { %733 = vmatpush.bf16.msra.mxu2 %v1373_v28 }
  0x44   : > { %746 = vmatpush.bf16.msra.mxu3 %v1381_v29 }
  0x45   : > { %708 = vmatpush.bf16.msra.mxu0 %v1356_v32 }
  0x46   : > { %721 = vmatpush.bf16.msra.mxu1 %v1364_v33 }
  0x47   : > { %734 = vmatpush.bf16.msra.mxu2 %v1372_v36 }
  0x48   : > { %747 = vmatpush.bf16.msra.mxu3 %v1380_v37  ;;  %709 = vmatmul.bf16.vlgmr.msra.gmra.mxu0 %v501_v42 }
  0x49   : > { %769 = vmatpush.bf16.msrb.mxu0 %v1686_v2  ;;  %722 = vmatmul.bf16.vlgmr.msra.gmra.mxu1 %v502_v43  ;;  %v1399_v2 = vld [vmem:[%s1682_s28 + $0x18] sm:$0xff] }
  0x4a   : > { %782 = vmatpush.bf16.msrb.mxu1 %v1689_v3  ;;  %735 = vmatmul.bf16.vlgmr.msra.gmra.mxu2 %v503_v40  ;;  %v1398_v3 = vld [vmem:[%s1682_s28 + $0x10] sm:$0xff] }
  0x4b   : > { %795 = vmatpush.bf16.msrb.mxu2 %v1692_v4  ;;  %748 = vmatmul.bf16.vlgmr.msra.gmra.mxu3 %v504_v41 }
  0x4c   : > { %808 = vmatpush.bf16.msrb.mxu3 %v1695_v5 }
  0x4d   : > { %770 = vmatpush.bf16.msrb.mxu0 %v1700_v6  ;;  %v1397_v6 = vld [vmem:[%s1682_s28 + $0x8] sm:$0xff] }
  0x4e   : > { %783 = vmatpush.bf16.msrb.mxu1 %v1703_v7 }
  0x4f   : > { %796 = vmatpush.bf16.msrb.mxu2 %v1708_v8 }
  0x50   : > { %809 = vmatpush.bf16.msrb.mxu3 %v1711_v9 }
  0x51   : > { %771 = vmatpush.bf16.msrb.mxu0 %v1716_v10  ;;  %v1396_v10 = vld [vmem:[%s1682_s28] sm:$0xff] }
  0x52   : > { %784 = vmatpush.bf16.msrb.mxu1 %v1719_v11 }
  0x53   : > { %797 = vmatpush.bf16.msrb.mxu2 %v1724_v12 }
  0x54   : > { %810 = vmatpush.bf16.msrb.mxu3 %v1727_v13 }
  0x55   : > { %772 = vmatpush.bf16.msrb.mxu0 %v1732_v14 }
  0x56   : > { %785 = vmatpush.bf16.msrb.mxu1 %v1735_v15 }
  0x57   : > { %798 = vmatpush.bf16.msrb.mxu2 %v1740_v16 }
  0x58   : > { %811 = vmatpush.bf16.msrb.mxu3 %v1743_v17 }
  0x59   : > { %773 = vmatpush.bf16.msrb.mxu0 %v1748_v18 }
  0x5a   : > { %786 = vmatpush.bf16.msrb.mxu1 %v1751_v19 }
  0x5b   : > { %799 = vmatpush.bf16.msrb.mxu2 %v1375_v20 }
  0x5c   : > { %812 = vmatpush.bf16.msrb.mxu3 %v1383_v21 }
  0x5d   : > { %774 = vmatpush.bf16.msrb.mxu0 %v1358_v22 }
  0x5e   : > { %787 = vmatpush.bf16.msrb.mxu1 %v1366_v23 }
  0x5f   : > { %800 = vmatpush.bf16.msrb.mxu2 %v1374_v24 }
  0x60   : > { %813 = vmatpush.bf16.msrb.mxu3 %v1382_v25 }
  0x61   : > { %775 = vmatpush.bf16.msrb.mxu0 %v1357_v26 }
  0x62   : > { %788 = vmatpush.bf16.msrb.mxu1 %v1365_v27 }
  0x63   : > { %801 = vmatpush.bf16.msrb.mxu2 %v1373_v28 }
  0x64   : > { %814 = vmatpush.bf16.msrb.mxu3 %v1381_v29 }
  0x65   : > { %776 = vmatpush.bf16.msrb.mxu0 %v1356_v32  ;;  %v821_v32 = vld [vmem:[#allocation2] sm:$0xff] }
  0x66   : > { %789 = vmatpush.bf16.msrb.mxu1 %v1364_v33 }
  0x67   : > { %802 = vmatpush.bf16.msrb.mxu2 %v1372_v36 }
  0x68   : > { %815 = vmatpush.bf16.msrb.mxu3 %v1380_v37  ;;  %777 = vmatmul.bf16.vlgmr.msrb.gmra.mxu0 %v761_v51 }
  0x69   : > { %790 = vmatmul.bf16.vlgmr.msrb.gmra.mxu1 %v762_v52  ;;  %904 = vmatpush.bf16.msra.mxu0 %v1403_v60 }
  0x6a   : > { %965 = vmatpush.bf16.msra.mxu1 %v1395_v50  ;;  %803 = vmatmul.bf16.vlgmr.msrb.gmra.mxu2 %v763_v53 }
  0x6b   : > { %816 = vmatmul.bf16.vlgmr.msrb.gmra.mxu3 %v764_v54 }
  0x6d   : > { %905 = vmatpush.bf16.msra.mxu0 %v1402_v62 }
  0x6e   : > { %966 = vmatpush.bf16.msra.mxu1 %v1394_v55 }
  0x71   : > { %906 = vmatpush.bf16.msra.mxu0 %v1401_v0 }
  0x72   : > { %967 = vmatpush.bf16.msra.mxu1 %v1393_v56 }
  0x75   : > { %907 = vmatpush.bf16.msra.mxu0 %v1400_v1 }
  0x76   : > { %968 = vmatpush.bf16.msra.mxu1 %v1392_v57 }
  0x79   : > { %908 = vmatpush.bf16.msra.mxu0 %v1399_v2 }
  0x7a   : > { %969 = vmatpush.bf16.msra.mxu1 %v1391_v58 }
  0x7d   : > { %909 = vmatpush.bf16.msra.mxu0 %v1398_v3 }
  0x7e   : > { %970 = vmatpush.bf16.msra.mxu1 %v1390_v59 }
  0x81   : > { %910 = vmatpush.bf16.msra.mxu0 %v1397_v6 }
  0x82   : > { %971 = vmatpush.bf16.msra.mxu1 %v1389_v61 }
  0x85   : > { %911 = vmatpush.bf16.msra.mxu0 %v1396_v10 }
  0x86   : > { %972 = vmatpush.bf16.msra.mxu1 %v1388_v63 }
  0xc5   : > { %v710_v4 = vpop.f32.mrf.mxu0 }
  0xc6   : > { %v723_v5 = vpop.f32.mrf.mxu1 }
  0xc7   : > { %v724_v7 = vadd.f32 %v723_v5, %v710_v4 }
  0xcd   : > { %v736_v8 = vpop.f32.mrf.mxu2  ;;  %v712_v13 = vpop.f32.mrf.mxu0 }
  0xce   : > { %v749_v9 = vpop.f32.mrf.mxu3  ;;  %v737_v11 = vadd.f32 %v736_v8, %v724_v7  ;;  %v725_v14 = vpop.f32.mrf.mxu1 }
  0xd0   : > { %v750_v12 = vadd.f32 %v749_v9, %v737_v11 }
  0xd2   : > { %v822_v15 = vpack.c.bf16 %v750_v12, %v750_v12 }
  0xd4   : > { %973 = vmatmul.bf16.vlgmr.msra.gmra.mxu1 %v822_v15 }
  0xd5   : > { %v738_v16 = vpop.f32.mrf.mxu2 }
  0xd6   : > { %v751_v17 = vpop.f32.mrf.mxu3 }
  0xe5   : > { %v778_v18 = vpop.f32.mrf.mxu0 }
  0xe6   : > { %v791_v19 = vpop.f32.mrf.mxu1 }
  0xe7   : > { %v792_v20 = vadd.f32 %v791_v19, %v778_v18 }
  0xed   : > { %v804_v21 = vpop.f32.mrf.mxu2  ;;  %v780_v24 = vpop.f32.mrf.mxu0 }
  0xee   : > { %v817_v22 = vpop.f32.mrf.mxu3  ;;  %v805_v23 = vadd.f32 %v804_v21, %v792_v20  ;;  %v793_v25 = vpop.f32.mrf.mxu1 }
  0xf0   : > { %v818_v26 = vadd.f32 %v817_v22, %v805_v23 }
  0xf2   : > { %v839_v27 = vpack.c.bf16 %v818_v26, %v818_v26 }
  0xf4   : > { %912 = vmatmul.bf16.vlgmr.msra.gmra.mxu0 %v839_v27 }
  0xf5   : > { %v806_v28 = vpop.f32.mrf.mxu2 }
  0xf6   : > { %v819_v29 = vpop.f32.mrf.mxu3 }
 0x151   : > { %v974_v30 = vpop.f32.mrf.mxu1 }
 0x159   : > { %v976_v31 = vpop.f32.mrf.mxu1 }
 0x171   : > { %v913_v33 = vpop.f32.mrf.mxu0 }
 0x172   : > { %v975_v34 = vadd.f32 %v974_v30, %v913_v33 }
 0x174   : > { %v978_v35 = vadd.f32 %v975_v34, %v821_v32 }
 0x175   : > { %984 = sbr.rel (%p1352_p1) target bundleno = 540 (0x21c), region = 64 }
 0x176   : > { %980 = vst.msk [vmem:[#allocation2] sm:$0xff] %vm979_vm1, %v978_v35 }
 0x179   : > { %v915_v36 = vpop.f32.mrf.mxu0 }
 0x17a   : > { %v1463_v38 = vld [vmem:[%s1850_s5] ss:$0 sm:$0xff]  ;;  %v1465_v44 = vld [vmem:[#allocation3] ss:$0 sm:$0xff]  ;;  %vm1020_vm3 = vcmask 7168  }
 0x17b   : > { %v1464_v40 = vld [vmem:[%s1851_s6] ss:$0 sm:$0xff] }
 0x17d   : > { %v985_v37 = vld [vmem:[#allocation2] sm:$0xff] }
 0x17e   : > { %v990_v39 = vadd.f32 %v1463_v38, %v985_v37 }
 0x180   : > { %1466 = vtanh.f32 %v990_v39 }
 0x186   : > { %v1467_v41 = vpop.eup %1466 }
 0x187   : > { %v996_v42 = vmul.f32 %v1467_v41, %v1464_v40 }
 0x189   : > { %v997_v43 = vsel %vm979_vm1, %v996_v42, 0.0 }
 0x18a   : > { %998 = vadd.xlane.f32.xlu0 %v997_v43 }
 0x1fd   : > { %v999_v45 = vpop.xlane.xlu0 %998 }
 0x1fe   : > { %v1004_v46 = vadd.f32 %v1465_v44, %v999_v45 }
 0x200   : > { %v1006_v47 = vand.u32 2147483647, %v1004_v46  ;;  %v1005_v58 = vmax.f32 %v1004_v46, 0.0 }
 0x202   : > { %v1007_v48 = vsub.f32 0.0, %v1006_v47 }
 0x204   : > { %v1008_v49 = vmul.f32 1.442695, %v1007_v48 }
 0x206   : > { %1468 = vpow2.f32 %v1008_v49 }
 0x20c   : > { %v1469_v50 = vpop.eup %1468 }
 0x20d   : > { %v1010_v51 = vadd.f32 1.0, %v1469_v50  ;;  %v1013_v52 = vmul.f32 -0.5, %v1469_v50  ;;  %v1016_v54 = vand.u32 2147483647, %v1469_v50 }
 0x20f   : > { %1470 = vlog2.f32 %v1010_v51  ;;  %v1014_v53 = vadd.f32 1.0, %v1013_v52  ;;  %vm1017_vm2 = vcmp.lt.f32.partialorder %v1016_v54, 0.0004427343 }
 0x211   : > { %v1015_v57 = vmul.f32 %v1469_v50, %v1014_v53 }
 0x215   : > { %v1471_v55 = vpop.eup %1470 }
 0x216   : > { %v1012_v56 = vmul.f32 0.6931472, %v1471_v55 }
 0x218   : > { %v1018_v59 = vsel %vm1017_vm2, %v1015_v57, %v1012_v56 }
 0x219   : > { %v1019_v60 = vadd.f32 %v1018_v59, %v1005_v58 }
 0x21b   : > { %1021 = vst.msk [vmem:[%s1853_s8] sm:$0xff] %vm1020_vm3, %v1019_v60 }
 0x21c PF: > { %s23_s12 = sadd.s32 1, %s1552_s12   ;;  %s1856_s29 = smov %s1536_s30 }
 0x21d   : > { %p20_p2 = scmp.ge.s32.totalorder %s23_s12, 4   ;;  %s1857_s30 = smov %s1540_s9 }
 0x21e   : > { %s1858_s9 = smov %s1655_s18  ;;  %s1859_s10 = smov %s1548_s11 }
 0x21f   : > { %s1860_s11 = smov %s1862_s13  ;;  %22 = sbr.rel (!%p20_p2) target bundleno = 7 (0x7), region = 112 }
 0x224   :  { %1041 = vsyncpa [#allocation5], 1 }
 0x225   :  { %1043 = vsyncpa [#allocation5 + $0x1], 1 }

</bundles_post_ra>
